<compile_context>
chip_gen: v7x
topology: tpu7x:2x2x1
jax: 0.10.0
libtpu: 0.0.40
codegen_flags: <defaults>
</compile_context>

<pallas_src>
import jax
import jax.numpy as jnp
from jax import lax
from jax.experimental import pallas as pl
from jax.experimental.pallas import tpu as pltpu


def _round_up(n, m):
    return ((n + m - 1) // m) * m


def _weighted_center_loss_kernel(x_ref, labels_ref, centers_wt_ref, cw_ref,
                                 csqcw_ref, out_ref):
    """One (TB, D) batch block -> one lane-dense (1, 128) partial sum."""
    x = x_ref[...]                # (TB, D) f32, streamed
    labels = labels_ref[...]      # (TB, 1) i32, streamed (-1 == padding row)
    cw = cw_ref[...]              # (1, C)  f32, resident: w_c
    csqcw = csqcw_ref[...]        # (1, C)  f32, resident: w_c * ||center_c||^2

    # Cross term straight off the MXU, contraction over the feature dim:
    # s[b, c] = -2 * w_c * <x_b, center_c>   (scaling folded into the weights).
    s = jnp.dot(x, centers_wt_ref[...],
                preferred_element_type=jnp.float32)               # (TB, C)

    x_sq = jnp.sum(x * x, axis=1, keepdims=True)                  # (TB, 1)

    # val_full[b, c] = w_c * (||x_b||^2 + ||center_c||^2 - 2 <x_b, center_c>)
    val_full = x_sq * cw + csqcw + s                               # (TB, C)

    tb, num_classes = val_full.shape
    classes = lax.broadcasted_iota(jnp.int32, (tb, num_classes), 1)
    mask = labels == classes      # padded rows (label -1): all False

    # Exact PyTorch semantics: masked-out entries are exact zeros that clamp
    # up to 1e-12; summing the whole block includes the (C-1)*1e-12 per-row
    # constant of the reference.  Padded rows contribute C*1e-12 each, removed
    # in the wrapper.
    masked = jnp.where(mask, val_full, 0.0)
    blk_sum = jnp.sum(jnp.clip(masked, 1e-12, 1e12), keepdims=True)  # (1, 1)

    # Lane-dense per-block output (no carried accumulator -> axis is parallel).
    out_ref[...] = jnp.broadcast_to(blk_sum, (1, 128))


def weighted_center_loss(x, centers, class_weights, labels, *, block_rows=None):
    """x: (B, D); centers: (C, D); class_weights: (C,); labels: (B,) int."""
    B, D = x.shape
    C, _ = centers.shape

    if block_rows is None:
        # Keep the per-step live set ((TB, D) x block + a few (TB, C)
        # intermediates) around a few MiB so it stays out of spill territory.
        per_row_bytes = 4 * (D + 4 * C + 2)
        block_rows = max(8, min(1024, (4 * 1024 * 1024) // max(per_row_bytes, 1)))
    tb = max(8, _round_up(block_rows, 8))
    tb = min(tb, _round_up(B, 8))
    b_pad = _round_up(B, tb)
    nb = b_pad // tb

    x_f = x.astype(jnp.float32)
    labels_i = labels.astype(jnp.int32)
    if b_pad != B:
        x_f = jnp.zeros((b_pad, D), jnp.float32).at[:B].set(x_f)
        # Sentinel label -1: padded rows select no class inside the kernel.
        labels_i = jnp.full((b_pad,), -1, jnp.int32).at[:B].set(labels_i)
    labels_2d = labels_i.reshape(b_pad, 1)

    centers_f = centers.astype(jnp.float32)
    cw = class_weights.astype(jnp.float32)
    # Fold (-2 * w_c) into the centers so the cross term needs no VPU scaling.
    centers_wt = (centers_f * (-2.0 * cw)[:, None]).T              # (D, C)
    cw_row = cw.reshape(1, C)                                      # (1, C)
    csqcw_row = (jnp.sum(centers_f * centers_f, axis=1) * cw).reshape(1, C)

    # VMEM budget: double-buffered x/labels stream + resident centers + slack.
    bytes_per_step = 4 * (2 * tb * (D + 1) + D * C + 2 * C + 4 * tb * C + 128)
    vmem_limit = int(min(48 * 1024 * 1024,
                         max(32 * 1024 * 1024, 2 * bytes_per_step)))

    partials = pl.pallas_call(
        _weighted_center_loss_kernel,
        out_shape=jax.ShapeDtypeStruct((1, nb * 128), jnp.float32),
        grid_spec=pltpu.PrefetchScalarGridSpec(
            num_scalar_prefetch=0,
            grid=(nb,),
            in_specs=[
                pl.BlockSpec((tb, D), lambda i: (i, 0)),   # x, streamed
                pl.BlockSpec((tb, 1), lambda i: (i, 0)),   # labels, streamed
                pl.BlockSpec((D, C), lambda i: (0, 0)),    # -2*w*centers^T
                pl.BlockSpec((1, C), lambda i: (0, 0)),    # w
                pl.BlockSpec((1, C), lambda i: (0, 0)),    # w * ||c||^2
            ],
            out_specs=pl.BlockSpec((1, 128), lambda i: (0, i)),
        ),
        compiler_params=pltpu.CompilerParams(
            # Per-block partial sums -> batch axis is parallel (megacore on v7x).
            dimension_semantics=("parallel",),
            vmem_limit_bytes=vmem_limit,
        ),
        cost_estimate=pl.CostEstimate(
            flops=2 * b_pad * C * D + 2 * b_pad * D + 6 * b_pad * C,
            transcendentals=0,
            bytes_accessed=4 * (b_pad * D + b_pad + C * D + 2 * C + nb * 128),
        ),
    )(x_f, labels_2d, centers_wt, cw_row, csqcw_row)

    # Each block broadcast its partial over 128 lanes; pick lane 0 per block.
    total = jnp.sum(partials.reshape(nb, 128)[:, 0])
    # Remove the C * 1e-12 contributed by every padded (sentinel) row.
    pad_correction = jnp.float32((b_pad - B) * C * 1e-12)
    return (total - pad_correction) / jnp.float32(B)


def reference_weighted_center_loss(x, centers, class_weights, labels):
    """Pure-JAX reference mirroring the PyTorch forward exactly."""
    B = x.shape[0]
    C = centers.shape[0]
    distmat = (
        jnp.sum(x ** 2, axis=1, keepdims=True)
        + jnp.sum(centers ** 2, axis=1, keepdims=True).T
        - 2.0 * x @ centers.T
    )
    classes = jnp.arange(C)
    mask = (labels[:, None] == classes[None, :]).astype(jnp.float32)
    weights = class_weights[None, :]
    dist = distmat * mask * weights
    return jnp.sum(jnp.clip(dist, 1e-12, 1e12)) / B


if __name__ == "__main__":
    num_classes = 16
    feat_dim = 32
    batch_size = 8

    key = jax.random.PRNGKey(0)
    k_centers, k_w, k_x, k_labels = jax.random.split(key, 4)

    # Deterministic parameter init (torch.randn -> standard normal).
    centers = jax.random.normal(k_centers, (num_classes, feat_dim), jnp.float32)
    class_weights = jax.random.uniform(k_w, (num_classes,), jnp.float32, 0.5, 1.5)

    # Example inputs.
    x = jax.random.normal(k_x, (batch_size, feat_dim), jnp.float32)
    labels = jax.random.randint(k_labels, (batch_size,), 0, num_classes, jnp.int32)

    loss = weighted_center_loss(x, centers, class_weights, labels)
    loss = jax.block_until_ready(loss)
    ref = reference_weighted_center_loss(x, centers, class_weights, labels)
    assert jnp.allclose(loss, ref, rtol=1e-5, atol=1e-5), (loss, ref)

    # Second check: B not a multiple of the block size, multi-block grid
    # (exercises sentinel-label padding + per-block partial-sum outputs).
    b2 = 13
    k_x2, k_l2 = jax.random.split(k_x)
    x2 = jax.random.normal(k_x2, (b2, feat_dim), jnp.float32)
    labels2 = jax.random.randint(k_l2, (b2,), 0, num_classes, jnp.int32)
    loss2 = weighted_center_loss(x2, centers, class_weights, labels2, block_rows=8)
    loss2 = jax.block_until_ready(loss2)
    ref2 = reference_weighted_center_loss(x2, centers, class_weights, labels2)
    assert jnp.allclose(loss2, ref2, rtol=1e-5, atol=1e-5), (loss2, ref2)

    print("KERNEL_OK")
</pallas_src>

<mosaic_0001>
module attributes {stable_mosaic.version = 11 : i64} {
  func.func @_weighted_center_loss_kernel(%arg0: i32, %arg1: memref<8x32xf32, #tpu.memory_space<vmem>>, %arg2: memref<8x1xi32, #tpu.memory_space<vmem>>, %arg3: memref<32x16xf32, #tpu.memory_space<vmem>>, %arg4: memref<1x16xf32, #tpu.memory_space<vmem>>, %arg5: memref<1x16xf32, #tpu.memory_space<vmem>>, %arg6: memref<1x128xf32, #tpu.memory_space<vmem>>) attributes {dimension_semantics = [#tpu.dimension_semantics<parallel>], iteration_bounds = array<i64: 1>, scalar_prefetch = 0 : i64, scratch_operands = 0 : i64, tpu.core_type = #tpu.core_type<tc>, window_params = [{transform_indices = @transform_0, window_bounds = array<i64: 8, 32>}, {transform_indices = @transform_1, window_bounds = array<i64: 8, 1>}, {pipeline_mode = #tpu.pipeline_mode<synchronous>, transform_indices = @transform_2, window_bounds = array<i64: 32, 16>}, {pipeline_mode = #tpu.pipeline_mode<synchronous>, transform_indices = @transform_3, window_bounds = array<i64: 1, 16>}, {pipeline_mode = #tpu.pipeline_mode<synchronous>, transform_indices = @transform_4, window_bounds = array<i64: 1, 16>}, {transform_indices = @transform_5, window_bounds = array<i64: 1, 128>}]} {
    %c0 = arith.constant 0 : index
    %c0_0 = arith.constant 0 : index
    %0 = vector.load %arg1[%c0, %c0_0] : memref<8x32xf32, #tpu.memory_space<vmem>>, vector<8x32xf32>
    %c0_1 = arith.constant 0 : index
    %c0_2 = arith.constant 0 : index
    %1 = vector.load %arg2[%c0_1, %c0_2] : memref<8x1xi32, #tpu.memory_space<vmem>>, vector<8x1xi32>
    %c0_3 = arith.constant 0 : index
    %c0_4 = arith.constant 0 : index
    %2 = vector.load %arg4[%c0_3, %c0_4] : memref<1x16xf32, #tpu.memory_space<vmem>>, vector<1x16xf32>
    %c0_5 = arith.constant 0 : index
    %c0_6 = arith.constant 0 : index
    %3 = vector.load %arg5[%c0_5, %c0_6] : memref<1x16xf32, #tpu.memory_space<vmem>>, vector<1x16xf32>
    %c0_7 = arith.constant 0 : index
    %c0_8 = arith.constant 0 : index
    %4 = vector.load %arg3[%c0_7, %c0_8] : memref<32x16xf32, #tpu.memory_space<vmem>>, vector<32x16xf32>
    %cst = arith.constant dense<0.000000e+00> : vector<8x16xf32>
    %5 = tpu.matmul %0, %4, %cst {dimension_numbers = #tpu.dot_dimension_numbers<[1], [0], [0], [1], [0, 0, 1, 1], [], []>} : vector<8x32xf32>, vector<32x16xf32>, vector<8x16xf32> -> vector<8x16xf32>
    %6 = arith.mulf %0, %0 : vector<8x32xf32>
    %cst_9 = arith.constant dense<0.000000e+00> : vector<8xf32>
    %7 = vector.multi_reduction <add>, %6, %cst_9 [1] : vector<8x32xf32> to vector<8xf32>
    %8 = vector.shape_cast %7 : vector<8xf32> to vector<8x1xf32>
    %9 = vector.broadcast %8 : vector<8x1xf32> to vector<8x16xf32>
    %10 = vector.broadcast %2 : vector<1x16xf32> to vector<8x16xf32>
    %11 = arith.mulf %9, %10 : vector<8x16xf32>
    %12 = vector.broadcast %3 : vector<1x16xf32> to vector<8x16xf32>
    %13 = arith.addf %11, %12 : vector<8x16xf32>
    %14 = arith.addf %13, %5 : vector<8x16xf32>
    %15 = tpu.iota {dimensions = array<i32: 1>} : vector<8x16xi32>
    %16 = vector.broadcast %1 : vector<8x1xi32> to vector<8x16xi32>
    %17 = arith.cmpi eq, %16, %15 : vector<8x16xi32>
    %cst_10 = arith.constant 0.000000e+00 : f32
    %18 = vector.broadcast %cst_10 : f32 to vector<8x16xf32>
    %19 = arith.select %17, %14, %18 : vector<8x16xi1>, vector<8x16xf32>
    %cst_11 = arith.constant 9.99999996E-13 : f32
    %cst_12 = arith.constant 9.99999995E+11 : f32
    %20 = vector.broadcast %cst_11 : f32 to vector<8x16xf32>
    %21 = arith.maximumf %20, %19 : vector<8x16xf32>
    %22 = vector.broadcast %cst_12 : f32 to vector<8x16xf32>
    %23 = arith.minimumf %22, %21 : vector<8x16xf32>
    %24 = vector.shape_cast %23 : vector<8x16xf32> to vector<1x8x16xf32>
    %cst_13 = arith.constant dense<0.000000e+00> : vector<1xf32>
    %25 = vector.multi_reduction <add>, %24, %cst_13 [1, 2] : vector<1x8x16xf32> to vector<1xf32>
    %26 = vector.shape_cast %25 : vector<1xf32> to vector<1x1x1xf32>
    %27 = vector.extract %26[0, 0, 0] : f32 from vector<1x1x1xf32>
    %28 = vector.broadcast %27 : f32 to vector<1x1xf32>
    %29 = vector.shape_cast %28 : vector<1x1xf32> to vector<1x1xf32>
    %30 = vector.broadcast %29 : vector<1x1xf32> to vector<1x128xf32>
    %c0_14 = arith.constant 0 : index
    %c0_15 = arith.constant 0 : index
    %31 = vector.load %arg6[%c0_14, %c0_15] : memref<1x128xf32, #tpu.memory_space<vmem>>, vector<1x128xf32>
    tpu.vector_store %arg6[%c0_14, %c0_15], %30 {strides = array<i32>} : memref<1x128xf32, #tpu.memory_space<vmem>>, vector<1x128xf32>,
    return
  }
  func.func @transform_0(%arg0: i32) -> (i32, i32) {
    %c0_i32 = arith.constant 0 : i32
    %c0_i32_0 = arith.constant 0 : i32
    return %arg0, %c0_i32 : i32, i32
  }
  func.func @transform_1(%arg0: i32) -> (i32, i32) {
    %c0_i32 = arith.constant 0 : i32
    %c0_i32_0 = arith.constant 0 : i32
    return %arg0, %c0_i32 : i32, i32
  }
  func.func @transform_2(%arg0: i32) -> (i32, i32) {
    %c0_i32 = arith.constant 0 : i32
    %c0_i32_0 = arith.constant 0 : i32
    %c0_i32_1 = arith.constant 0 : i32
    return %c0_i32, %c0_i32_0 : i32, i32
  }
  func.func @transform_3(%arg0: i32) -> (i32, i32) {
    %c0_i32 = arith.constant 0 : i32
    %c0_i32_0 = arith.constant 0 : i32
    %c0_i32_1 = arith.constant 0 : i32
    return %c0_i32, %c0_i32_0 : i32, i32
  }
  func.func @transform_4(%arg0: i32) -> (i32, i32) {
    %c0_i32 = arith.constant 0 : i32
    %c0_i32_0 = arith.constant 0 : i32
    %c0_i32_1 = arith.constant 0 : i32
    return %c0_i32, %c0_i32_0 : i32, i32
  }
  func.func @transform_5(%arg0: i32) -> (i32, i32) {
    %c0_i32 = arith.constant 0 : i32
    %c0_i32_0 = arith.constant 0 : i32
    return %c0_i32, %arg0 : i32, i32
  }
}

</mosaic_0001>

<bundles_post_ra>
// kernel: tpu_custom_call.1
= control target key start
LH: loop header
LB: loop body
LE: loop exit
PB: predicated region body
PF: predicated region fallthrough
CT: control target
= control target key end

     0   :  { %v215_v3 = vmov 0.0|0.0   ;;  %vm216_vm0 = vmmov 0   ;;  %v217_v6 = vmov 0.0   ;;  %v218_v9 = vmov 0   ;;  %s286_s0 = inlined_call_operand.vmem [shape: f32[8,32], index: 0, kind: input, shape index: {}]   ;;  %s287_s1 = inlined_call_operand.vmem [shape: s32[8,1], index: 1, kind: input, shape index: {}]   ;;  %s288_s2 = inlined_call_operand.vmem [shape: f32[32,16], index: 2, kind: input, shape index: {}]   ;;  %s289_s3 = inlined_call_operand.vmem [shape: f32[1,16], index: 3, kind: input, shape index: {}]   ;;  %s290_s4 = inlined_call_operand.vmem [shape: f32[1,16], index: 4, kind: input, shape index: {}]   ;;  %s291_s5 = inlined_call_operand.hbm [shape: f32[1,128], index: 5, kind: output, shape index: {}]  }
   0x1   :  { %v25_v0 = vld [vmem:[%s288_s2] sm:$0xff]  ;;  %v26_v1 = vld [vmem:[%s288_s2 + $0x8] sm:$0xff]  ;;  %v27_v2 = vld [vmem:[%s288_s2 + $0x10] sm:$0xff]  ;;  %177 = vmatprep.subr.bf16.mxu0 %v215_v3  ;;  %174 = vmatprep.mubr.msk.f32.mxu0 %vm216_vm0, %v217_v6 }
   0x2   :  { %v178_v4 = vpack.c.bf16 %v26_v1, %v25_v0  ;;  %v28_v5 = vld [vmem:[%s288_s2 + $0x18] sm:$0xff]  ;;  %v21_v7 = vld [vmem:[%s286_s0] sm:$0xff]  ;;  %190 = vset.pattern.permute.xlu0 %v218_v9 }
   0x3   :  { %v103_v8 = vmul.f32 %v21_v7, %v21_v7 }
   0x4   :  { %10 = vsyncpa [#allocation3], 0  ;;  %179 = vmatpush3.bf16.msra.mxu0 %v178_v4  ;;  %v181_v10 = vpack.c.bf16 %v28_v5, %v27_v2  ;;  %vm29_vm1 = vcmask 261120   ;;  %v22_v12 = vld [vmem:[%s287_s1] sm:$0xff]  ;;  %v122_v15 = vlaneseq  ;;  %vm131_vm3 = vcmask 130048   ;;  %s219_s1 = smov [#allocation2]  }
   0x5   :  { %180 = vmatprep.subr.bf16.mxu0 %v215_v3  ;;  %v104_v11 = vsel %vm29_vm1, %v103_v8, 0.0  ;;  %v159_v13 = vld [vmem:[%s289_s3] ss:$0 sm:$0xff]  ;;  %s150_s3 = sshll.u32 %s219_s1, 4  ;;  %s151_s3 = int_to_ptr.vmem [resolvable:$true] %s150_s3 }
   0x6   :  { %105 = vadd.xlane.f32.xlu0 %v104_v11  ;;  %v160_v17 = vld [vmem:[%s290_s4] ss:$0 sm:$0xff]  ;;  %v123_v18 = vand.u32 127, %v122_v15  ;;  %s191_s7 = scalar_lea.vmem %s151_s3, 16  ;;  %s195_s8 = scalar_lea.vmem %s151_s3, 32 }
   0x7   :  { %p192_p0 = scmp.ne.s32.totalorder %s151_s3, %s191_s7  ;;  %p196_p1 = scmp.lt.s32.totalorder %s151_s3, %s151_s3 }
   0x8   :  { %182 = vmatpush3.bf16.msra.mxu0 %v181_v10  ;;  %p197_p2 = scmp.lt.s32.totalorder %s195_s8, %s191_s7 }
   0xa   :  { %p198_p3 = por %p197_p2, %p196_p1 }
   0xb   :  { %175 = vmatmul.mubr.msk.f32.vlgmr.msra.gmra.mrb[0].mxu0 %vm29_vm1, %v21_v7 }
   0xc   :  { %p199_p4 = pnand %p198_p3, %p192_p0 }
  0x1c   :  { %125 = vperm.xlu0 %190, %v22_v12  }
  0x93   :  { %v106_v14 = vpop.xlane.xlu0 %105 }
  0x94   :  { %v113_v16 = vmul.f32 %v159_v13, %v106_v14 }
  0x96   :  { %v120_v20 = vadd.f32 %v160_v17, %v113_v16 }
  0x9b   :  { %v126_v19 = vpop.permute.xlu0 %125 }
  0x9c   :  { %vm127_vm2 = vcmp.eq.s32.totalorder %v126_v19, %v123_v18 }
  0xde   :  { %v99_v21 = vpop.f32.mrb[0].mxu0 }
  0xdf   :  { %v121_v22 = vadd.f32 %v120_v20, %v99_v21  ;;  %v176_v23 = vpop.f32.mrb[1].mxu0 }
  0xe1   :  { %v128_v24 = vsel %vm127_vm2, %v121_v22, 0.0 }
  0xe2   :  { %v129_v25 = vmax.f32 %v128_v24, 1e-12 }
  0xe4   :  { %v130_v26 = vmin.f32 %v129_v25, 1e+12 }
  0xe6   :  { %v132_v27 = vsel %vm131_vm3, %v130_v26, 0.0 }
  0xe7   :  { %133 = vadd.xlane.f32.xlu1 %v132_v27 }
 0x174   :  { %v134_v28 = vpop.xlane.xlu1 %133 }
 0x175   :  { %v135_v29 = vrot.slane %v134_v28, 4 }
 0x177   :  { %v136_v30 = vadd.f32 %v135_v29, %v134_v28 }
 0x179   :  { %v137_v31 = vrot.slane %v136_v30, 2 }
 0x17b   :  { %v138_v32 = vadd.f32 %v137_v31, %v136_v30 }
 0x17d   :  { %v139_v33 = vrot.slane %v138_v32, 1 }
 0x17f   :  { %v140_v34 = vadd.f32 %v139_v33, %v138_v32 }
 0x181   :  { %183 = vpush %v140_v34 }
 0x1b2   :  { %s184_s4 = spop %183 }
 0x1b3   :  { %v142_v35 = vstv %s184_s4 }
 0x1b4   :  { %143 = vst [vmem:[#allocation2] sm:$0x1] %v142_v35 }
 0x1b5   :  { %202 = shalt.err (!%p199_p4)
}
 0x1b6   :  { %s203_s11 = scalar_lea.hbm %s291_s5, 16 }
 0x1b7   :  { %p204_p5 = scmp.ne.s32.totalorder %s291_s5, %s203_s11  ;;  %p207_p6 = scmp.lt.u32.totalorder %s203_s11, %s291_s5 }
 0x1b9   :  { %p209_p7 = pnand %p207_p6, %p204_p5 }
 0x1bb   :  { %212 = shalt.err (!%p209_p7)
}
 0x1bc   :  { %153 = dma.vmem_to_hbm [thread:$0]  %s151_s3, 16, %s291_s5, [#allocation3]  }
 0x1bd   :  { %213 = dma.done.wait [#allocation3], 16  }
 0x1be   :  { %214 = vsyncadd [#allocation3], 4294967280 }
 0x1bf   :  { %157 = vsyncpa [#allocation3], 1 }

</bundles_post_ra>
